<compile_context>
chip_gen: v7x
topology: tpu7x:2x2x1
jax: 0.10.0
libtpu: 0.0.40
codegen_flags: <defaults>
</compile_context>

<pallas_src>
import jax
import jax.numpy as jnp
from jax.experimental import pallas as pl
from jax.experimental.pallas import tpu as pltpu


def _round_up(n, m):
    return ((n + m - 1) // m) * m


def _auto_block_rows(B, D, itemsize):
    """Pick a row tile so each x block is ~1-2 MiB (per-grid-step overhead ~0.35us,
    so tiny tiles are overhead-bound), while keeping >=4 grid steps when B allows."""
    target_bytes = 2 << 20
    tb = _round_up(max(target_bytes // max(D * itemsize, 1), 8), 8)
    tb = min(tb, 8192)                                    # hard cap on rows per step
    tb = min(tb, max(_round_up(pl.cdiv(B, 4), 8), 8))     # keep the grid multi-step
    return max(tb, 8)


def _mlp_kernel(x_ref, w1_ref, b1_ref, w2_ref, b2_ref, o_ref):
    # Layer 1 on the MXU: (tb, D) @ (D, H) -> (tb, H), f32 accumulation.
    h = jnp.dot(x_ref[...], w1_ref[...], preferred_element_type=jnp.float32)
    h = jnp.maximum(h + b1_ref[...], 0.0)                  # bias + ReLU (VPU), f32

    # Layer 2 (H -> 1): broadcast multiply + lane reduction instead of an N=1 MXU
    # matmul — avoids a lane-padded vmatmul / result-FIFO pop for a 1-wide output.
    z = jnp.sum(h * w2_ref[...], axis=-1) + b2_ref[0, 0]   # (tb,)

    # Exact sigmoid: exp on the EUP; the exact reciprocal's extra Newton step is free
    # in this HBM-bound kernel and keeps probabilities <= 1.0.
    p = 1.0 / (1.0 + jnp.exp(-z))

    # Lane-dense store: output block is (1, 1, tb), written with full-width vst.
    o_ref[...] = p.reshape(o_ref.shape)


def spam_classifier_forward(x, w1, b1, w2, b2, *, block_rows=None, compute_dtype=None):
    """x: (B, D); w1: (D, H); b1: (1, H); w2: (1, H); b2: (1, 1).

    Returns sigmoid(relu(x @ w1 + b1) @ w2.T + b2).squeeze()  (matches the PyTorch
    module, including 0-d output for B == 1).
    """
    B, D = x.shape
    H = w1.shape[1]

    if compute_dtype is not None:
        # NOTE: prefer feeding x already in bf16 — a wrapper-side cast of x costs one
        # extra full HBM pass. Weights are tiny, so casting them here is free.
        x = x.astype(compute_dtype)
        w1 = w1.astype(compute_dtype)

    itemsize = jnp.dtype(x.dtype).itemsize
    tb = block_rows if block_rows is not None else _auto_block_rows(B, D, itemsize)
    tb = max(8, _round_up(min(int(tb), _round_up(B, 8)), 8))
    num_tiles = pl.cdiv(B, tb)

    # Explicit scoped-VMEM budget: x double buffer + resident weights + f32 activations
    # + output tiles + headroom.  Clamp at 64 MiB (v7x physical VMEM per TensorCore).
    # TODO(synk): for extremely large D (>~64K rows of w1) add a K-tiling grid axis
    # with an f32 accumulator instead of shrinking tb below the ~1 MiB-per-step point.
    vmem_bytes = (2 * tb * D * itemsize                       # x (double-buffered)
                  + 2 * D * H * jnp.dtype(w1.dtype).itemsize  # w1 (worst case 2 bufs)
                  + 4 * 2 * 2 * H                             # b1, w2
                  + 2 * tb * 4                                # output tiles
                  + 8 * tb * H                                # f32 intermediates
                  + (2 << 20))                                # headroom / scratch
    vmem_limit = int(min(max(vmem_bytes, 8 << 20), 64 << 20))

    out = pl.pallas_call(
        _mlp_kernel,
        out_shape=jax.ShapeDtypeStruct((num_tiles, 1, tb), jnp.float32),
        grid_spec=pltpu.PrefetchScalarGridSpec(
            num_scalar_prefetch=0,
            grid=(num_tiles,),
            in_specs=[
                pl.BlockSpec((tb, D), lambda i: (i, 0)),        # x: streamed row tiles
                pl.BlockSpec((D, H), lambda i: (0, 0)),         # w1: VMEM-resident
                pl.BlockSpec((1, H), lambda i: (0, 0)),         # b1: VMEM-resident
                pl.BlockSpec((1, H), lambda i: (0, 0)),         # w2 row: VMEM-resident
                pl.BlockSpec(memory_space=pltpu.MemorySpace.SMEM),  # b2: SMEM scalar
            ],
            out_specs=pl.BlockSpec((1, 1, tb), lambda i: (i, 0, 0)),  # lane-dense
        ),
        compiler_params=pltpu.CompilerParams(
            # Independent row tiles -> shard grid steps across TensorCores (v7x);
            # harmless no-op on single-TC v5e/v6e.
            dimension_semantics=("parallel",),
            vmem_limit_bytes=vmem_limit,
        ),
        cost_estimate=pl.CostEstimate(
            flops=2 * B * D * H + 3 * B * H,
            transcendentals=B,                                  # exp per row
            bytes_accessed=(itemsize * B * D
                            + jnp.dtype(w1.dtype).itemsize * D * H
                            + 4 * (2 * H + 1)
                            + 4 * num_tiles * tb),
        ),
    )(x, w1, b1, w2, b2)

    # Flatten lane-dense tiles, drop the out-of-bounds tail rows of the last tile,
    # then full squeeze to match torch's .squeeze() semantics (0-d for B == 1).
    return jnp.squeeze(out.reshape(num_tiles * tb)[:B])


def init_params(key, input_dim, hidden=64):
    """Deterministic init mimicking PyTorch Linear default (uniform +-1/sqrt(fan_in))."""
    k1, k2, k3, k4 = jax.random.split(key, 4)
    bound1 = 1.0 / jnp.sqrt(jnp.float32(input_dim))
    bound2 = 1.0 / jnp.sqrt(jnp.float32(hidden))
    w1 = jax.random.uniform(k1, (input_dim, hidden), jnp.float32, -bound1, bound1)
    b1 = jax.random.uniform(k2, (1, hidden), jnp.float32, -bound1, bound1)
    # Second layer kept as a (1, hidden) row vector (native torch Linear(64,1) layout).
    w2 = jax.random.uniform(k3, (1, hidden), jnp.float32, -bound2, bound2)
    b2 = jax.random.uniform(k4, (1, 1), jnp.float32, -bound2, bound2)
    return w1, b1, w2, b2


if __name__ == "__main__":
    key = jax.random.PRNGKey(0)
    k_x, k_p = jax.random.split(key)

    batch, input_dim = 20, 32          # non-multiple-of-8 batch: exercises the
    x = jax.random.normal(k_x, (batch, input_dim), dtype=jnp.float32)
    w1, b1, w2, b2 = init_params(k_p, input_dim)

    # block_rows=8 at this toy size forces a multi-step grid (20 rows -> 3 tiles with a
    # partial final block), exercising the same streamed, unpadded path used for large
    # batches (where tb is auto-sized to ~1-2 MiB of x per step).
    y = spam_classifier_forward(x, w1, b1, w2, b2, block_rows=8)
    jax.block_until_ready(y)

    # sanity: shape (B,), values are probabilities
    assert y.shape == (batch,), y.shape
    assert bool(jnp.all(jnp.isfinite(y)))
    assert bool(jnp.all((y >= 0.0) & (y <= 1.0 + 1e-6)))

    # reference check in plain JAX
    h_ref = jnp.maximum(x @ w1 + b1, 0.0)
    y_ref = jax.nn.sigmoid(h_ref @ w2.T + b2).squeeze()
    assert bool(jnp.allclose(y, y_ref, atol=1e-4, rtol=1e-4)), (
        float(jnp.max(jnp.abs(y - y_ref))))

    print("KERNEL_OK")
</pallas_src>

<mosaic_0001>
module attributes {stable_mosaic.version = 11 : i64} {
  func.func @_mlp_kernel(%arg0: i32, %arg1: memref<8x32xf32, #tpu.memory_space<vmem>>, %arg2: memref<32x64xf32, #tpu.memory_space<vmem>>, %arg3: memref<1x64xf32, #tpu.memory_space<vmem>>, %arg4: memref<1x64xf32, #tpu.memory_space<vmem>>, %arg5: memref<1x1xf32, #tpu.memory_space<smem>>, %arg6: memref<1x1x8xf32, #tpu.memory_space<vmem>>) attributes {dimension_semantics = [#tpu.dimension_semantics<parallel>], iteration_bounds = array<i64: 3>, scalar_prefetch = 0 : i64, scratch_operands = 0 : i64, tpu.core_type = #tpu.core_type<tc>, window_params = [{transform_indices = @transform_0, window_bounds = array<i64: 8, 32>}, {pipeline_mode = #tpu.pipeline_mode<synchronous>, transform_indices = @transform_1, window_bounds = array<i64: 32, 64>}, {pipeline_mode = #tpu.pipeline_mode<synchronous>, transform_indices = @transform_2, window_bounds = array<i64: 1, 64>}, {pipeline_mode = #tpu.pipeline_mode<synchronous>, transform_indices = @transform_3, window_bounds = array<i64: 1, 64>}, {transform_indices = @transform_4, window_bounds = array<i64: 1, 1>}, {transform_indices = @transform_5, window_bounds = array<i64: 1, 1, 8>}]} {
    %c0 = arith.constant 0 : index
    %c0_0 = arith.constant 0 : index
    %0 = vector.load %arg1[%c0, %c0_0] : memref<8x32xf32, #tpu.memory_space<vmem>>, vector<8x32xf32>
    %c0_1 = arith.constant 0 : index
    %c0_2 = arith.constant 0 : index
    %1 = vector.load %arg2[%c0_1, %c0_2] : memref<32x64xf32, #tpu.memory_space<vmem>>, vector<32x64xf32>
    %cst = arith.constant dense<0.000000e+00> : vector<8x64xf32>
    %2 = tpu.matmul %0, %1, %cst {dimension_numbers = #tpu.dot_dimension_numbers<[1], [0], [0], [1], [0, 0, 1, 1], [], []>} : vector<8x32xf32>, vector<32x64xf32>, vector<8x64xf32> -> vector<8x64xf32>
    %c0_3 = arith.constant 0 : index
    %c0_4 = arith.constant 0 : index
    %3 = vector.load %arg3[%c0_3, %c0_4] : memref<1x64xf32, #tpu.memory_space<vmem>>, vector<1x64xf32>
    %4 = vector.broadcast %3 : vector<1x64xf32> to vector<8x64xf32>
    %5 = arith.addf %2, %4 : vector<8x64xf32>
    %cst_5 = arith.constant 0.000000e+00 : f32
    %6 = vector.broadcast %cst_5 : f32 to vector<8x64xf32>
    %7 = arith.maximumf %5, %6 : vector<8x64xf32>
    %c0_6 = arith.constant 0 : index
    %c0_7 = arith.constant 0 : index
    %8 = vector.load %arg4[%c0_6, %c0_7] : memref<1x64xf32, #tpu.memory_space<vmem>>, vector<1x64xf32>
    %9 = vector.broadcast %8 : vector<1x64xf32> to vector<8x64xf32>
    %10 = arith.mulf %7, %9 : vector<8x64xf32>
    %cst_8 = arith.constant dense<0.000000e+00> : vector<8xf32>
    %11 = vector.multi_reduction <add>, %10, %cst_8 [1] : vector<8x64xf32> to vector<8xf32>
    %c0_9 = arith.constant 0 : index
    %c0_10 = arith.constant 0 : index
    %12 = memref.load %arg5[%c0_9, %c0_10] : memref<1x1xf32, #tpu.memory_space<smem>>
    %13 = vector.broadcast %12 : f32 to vector<8xf32>
    %14 = arith.addf %11, %13 : vector<8xf32>
    %cst_11 = arith.constant 0.000000e+00 : f32
    %15 = vector.broadcast %cst_11 : f32 to vector<8xf32>
    %16 = arith.subf %15, %14 : vector<8xf32>
    %17 = math.exp %16 : vector<8xf32>
    %cst_12 = arith.constant 1.000000e+00 : f32
    %18 = vector.broadcast %cst_12 : f32 to vector<8xf32>
    %19 = arith.addf %18, %17 : vector<8xf32>
    %cst_13 = arith.constant 1.000000e+00 : f32
    %20 = vector.broadcast %cst_13 : f32 to vector<8xf32>
    %21 = arith.divf %20, %19 : vector<8xf32>
    %22 = vector.shape_cast %21 : vector<8xf32> to vector<1x1x8xf32>
    %c0_14 = arith.constant 0 : index
    %c0_15 = arith.constant 0 : index
    %c0_16 = arith.constant 0 : index
    %23 = vector.load %arg6[%c0_14, %c0_15, %c0_16] : memref<1x1x8xf32, #tpu.memory_space<vmem>>, vector<1x1x8xf32>
    tpu.vector_store %arg6[%c0_14, %c0_15, %c0_16], %22 {strides = array<i32>} : memref<1x1x8xf32, #tpu.memory_space<vmem>>, vector<1x1x8xf32>,
    return
  }
  func.func @transform_0(%arg0: i32) -> (i32, i32) {
    %c0_i32 = arith.constant 0 : i32
    %c0_i32_0 = arith.constant 0 : i32
    return %arg0, %c0_i32 : i32, i32
  }
  func.func @transform_1(%arg0: i32) -> (i32, i32) {
    %c0_i32 = arith.constant 0 : i32
    %c0_i32_0 = arith.constant 0 : i32
    %c0_i32_1 = arith.constant 0 : i32
    return %c0_i32, %c0_i32_0 : i32, i32
  }
  func.func @transform_2(%arg0: i32) -> (i32, i32) {
    %c0_i32 = arith.constant 0 : i32
    %c0_i32_0 = arith.constant 0 : i32
    %c0_i32_1 = arith.constant 0 : i32
    return %c0_i32, %c0_i32_0 : i32, i32
  }
  func.func @transform_3(%arg0: i32) -> (i32, i32) {
    %c0_i32 = arith.constant 0 : i32
    %c0_i32_0 = arith.constant 0 : i32
    %c0_i32_1 = arith.constant 0 : i32
    return %c0_i32, %c0_i32_0 : i32, i32
  }
  func.func @transform_4(%arg0: i32) -> (i32, i32) {
    %c0_i32 = arith.constant 0 : i32
    %c0_i32_0 = arith.constant 0 : i32
    %c0_i32_1 = arith.constant 0 : i32
    return %c0_i32, %c0_i32_0 : i32, i32
  }
  func.func @transform_5(%arg0: i32) -> (i32, i32, i32) {
    %c0_i32 = arith.constant 0 : i32
    %c0_i32_0 = arith.constant 0 : i32
    %c0_i32_1 = arith.constant 0 : i32
    return %arg0, %c0_i32, %c0_i32_0 : i32, i32, i32
  }
}

</mosaic_0001>

<bundles_post_ra>
// kernel: tpu_custom_call.1
= control target key start
LH: loop header
LB: loop body
LE: loop exit
PB: predicated region body
PF: predicated region fallthrough
CT: control target
= control target key end

     0   :  { %s930_s0 = inlined_call_operand.hbm [shape: f32[20,32], index: 0, kind: input, shape index: {}]   ;;  %s931_s1 = inlined_call_operand.hbm [shape: f32[32,64], index: 1, kind: input, shape index: {}]   ;;  %s932_s2 = inlined_call_operand.vmem [shape: f32[1,64], index: 2, kind: input, shape index: {}]   ;;  %s933_s3 = inlined_call_operand.vmem [shape: f32[1,64], index: 3, kind: input, shape index: {}]   ;;  %s934_s4 = inlined_call_operand.<no memory space> [shape: f32[1,1], index: 4, kind: input, shape index: {}]   ;;  %s935_s5 = inlined_call_operand.hbm [shape: f32[3,1,8], index: 5, kind: output, shape index: {}]  }
   0x1   :  { %10 = sst [smem:[#allocation2]] %s934_s4 }
   0x2   :  { %11 = vsyncpa [#allocation4], 0 }
   0x3   :  { %13 = vsyncpa [#allocation4 + $0x1], 0 }
   0x4   :  { %14 = vsyncpa [#allocation7], 0 }
   0x5   :  { %15 = vsyncpa [#allocation5], 0 }
   0x6   :  { %17 = vsyncpa [#allocation5 + $0x1], 0  ;;  %s736_s20 = smov 0   ;;  %s738_s21 = smov 0  }
   0x7   :  { %s740_s22 = smov 0   ;;  %s742_s23 = smov 0  }
   0x8 LB: > { %s757_s4 = sadd.s32 4294967295, %s693_s23   ;;  %s462_s24 = sadd.s32 4294967294, %s693_s23   ;;  %s693_s23 = sphi %s742_s23, %s954_s23   ;;  %s689_s22 = sphi %s740_s22, %s953_s22   ;;  %s685_s21 = sphi %s738_s21, %s952_s21   ;;  %s681_s20 = sphi %s736_s20, %s951_s20  }
   0x9   : > { %p43_p0 = scmp.ne.s32.totalorder %s685_s21, %s681_s20  ;;  %p936_p1 = scmp.eq.s32.totalorder %s757_s4, 0 }
   0xa   : > { %p157_p3 = scmp.eq.s32.totalorder %s462_s24, 2  ;;  %p463_p5 = scmp.ge.s32.totalorder %s693_s23, 1 }
   0xb   : > { %p766_p4 = por %p936_p1, %p43_p0  ;;  %p164_p7 = scmp.lt.s32.totalorder %s693_s23, 4 }
   0xc   : > { %p771_p6 = por %p157_p3, %p43_p0  ;;  %s695_s28 = smov [#allocation6]  }
   0xd   : > { %s939_s25 = scalar_select %p766_p4, 1, 0 }
   0xe   : > { %s940_s26 = scalar_select %p771_p6, 1, 0 }
   0xf   : > { %p776_p8 = pnand %p463_p5, %p164_p7  ;;  %s176_s29 = sshll.u32 %s695_s28, 4  ;;  %s177_s29 = int_to_ptr.vmem [resolvable:$true] %s176_s29 }
  0x10   : > { %s789_s6 = sadd.s32 1, %s693_s23   ;;  %s30_s7 = sadd.s32 1, %s689_s22 }
  0x11   : > { %s941_s27 = scalar_select %p776_p8, 1, 0 }
  0x12   : > { %p507_p9 = pneg %p776_p8  ;;  %s27_s8 = ssub.s32 %s693_s23, %s789_s6 }
  0x13   : > { %s565_s11 = scalar_lea.hbm %s931_s1, 512 }
  0x14   : > { %p784_p10 = pnand %p507_p9, %p936_p1  ;;  %p566_p11 = scmp.ne.s32.totalorder %s931_s1, %s565_s11 }
  0x15   : > { %p572_p3 = scmp.lt.u32.totalorder %s565_s11, %s931_s1 }
  0x16   : > { %p567_p12 = pneg %p784_p10 }
  0x18   : > { %p568_p13 = pnand %p567_p12, %p566_p11 }
  0x1a   : > { %p569_p0 = pneg %p568_p13 }
  0x1c   : > { %p574_p5 = pnand %p572_p3, %p569_p0 }
  0x1e   : > { %577 = shalt.err (!%p574_p5)
}
  0x1f   : > { %s578_s16 = scalar_lea.vmem %s177_s29, 512  ;;  %p586_p2 = scmp.lt.s32.totalorder %s177_s29, %s177_s29 }
  0x20   : > { %p579_p7 = scmp.ne.s32.totalorder %s177_s29, %s578_s16  ;;  %p587_p6 = scmp.lt.s32.totalorder %s578_s16, %s578_s16 }
  0x22   : > { %p581_p9 = pnand %p579_p7, %p567_p12  ;;  %p588_p4 = por %p587_p6, %p586_p2 }
  0x24   : > { %p582_p1 = pneg %p581_p9 }
  0x26   : > { %p589_p8 = pnand %p588_p4, %p582_p1 }
  0x28   : > { %592 = shalt.err (!%p589_p8)
}
  0x29   : > { %s696_s17 = smov 128   ;;  %s697_s18 = smov 8  }
  0x2a   : > { %510 = dma.hbm_to_vmem [thread:$0]  (!%p784_p10), %s931_s1, 512, %s177_s29, [#allocation7], %s696_s17, %s696_s17, %s697_s18  }
  0x2b   : > { %p28_p11 = scmp.eq.s32.totalorder %s27_s8, 0  ;;  %p37_p2 = scmp.ne.s32.totalorder %s689_s22, %s685_s21 }
  0x2c   : > { %p38_p1 = scmp.eq.s32.totalorder %s693_s23, 0  ;;  %p520_p4 = scmp.lt.s32.totalorder %s693_s23, 3 }
  0x2d   : > { %s815_s28 = scalar_select %p28_p11, %s689_s22, %s30_s7  }
  0x2e   : > { %p39_p6 = por %p38_p1, %p37_p2  ;;  %p943_p8 = scmp.eq.s32.totalorder %s757_s4, 2 }
  0x2f   : > { %s199_s10 = sand.u32 1, %s689_s22   ;;  %s467_s11 = sshll.u32 %s693_s23, 7 }
  0x30   : > { %p819_p12 = por %p943_p8, %p37_p2  ;;  %s466_s12 = sshll.u32 %s199_s10, 3 }
  0x31   : > { %s828_s14 = scalar_lea.hbm %s930_s0, %s467_s11  ;;  %s203_s29 = scalar_lea.vmem [#allocation3], %s466_s12 }
  0x32   : > { %s210_s7 = sshll.u32 %s203_s29, 4  ;;  %p830_p10 = pnand %p520_p4, %p39_p6  ;;  %s834_s7 = int_to_ptr.vmem [resolvable:$true] %s210_s7 }
  0x33   : > { %s200_s15 = scalar_lea.sflag [#allocation4], %s199_s10  ;;  %s593_s16 = scalar_lea.hbm %s828_s14, 128 }
  0x34   : > { %p594_p13 = scmp.ne.s32.totalorder %s828_s14, %s593_s16  ;;  %p595_p0 = pneg %p830_p10 }
  0x35   : > { %s598_s19 = scalar_lea.hbm %s930_s0, 384  ;;  %p599_p7 = scmp.lt.u32.totalorder %s828_s14, %s930_s0 }
  0x36   : > { %p596_p3 = pnand %p595_p0, %p594_p13  ;;  %p600_p9 = scmp.lt.u32.totalorder %s598_s19, %s593_s16 }
  0x37   : > { %p602_p2 = scmp.lt.u32.totalorder %s593_s16, %s828_s14 }
  0x38   : > { %p597_p5 = pneg %p596_p3  ;;  %p601_p11 = por %p600_p9, %p599_p7 }
  0x3a   : > { %p603_p1 = por %p602_p2, %p601_p11 }
  0x3c   : > { %p604_p4 = pnand %p603_p1, %p597_p5 }
  0x3e   : > { %607 = shalt.err (!%p604_p4)
}
  0x3f   : > { %s608_s10 = scalar_lea.vmem %s834_s7, 128  ;;  %s698_s12 = smov [#allocation3]  }
  0x40   : > { %p609_p6 = scmp.ne.s32.totalorder %s834_s7, %s608_s10  ;;  %s613_s30 = sshll.u32 %s698_s12, 4  ;;  %s614_s30 = int_to_ptr.vmem [resolvable:$false] %s613_s30 }
  0x41   : > { %s615_s13 = scalar_lea.vmem %s614_s30, 256  ;;  %p616_p3 = scmp.lt.s32.totalorder %s834_s7, %s614_s30 }
  0x42   : > { %p611_p8 = pnand %p609_p6, %p595_p0  ;;  %p617_p7 = scmp.lt.s32.totalorder %s615_s13, %s608_s10 }
  0x44   : > { %p612_p13 = pneg %p611_p8  ;;  %p618_p9 = por %p617_p7, %p616_p3 }
  0x46   : > { %p619_p11 = pnand %p618_p9, %p612_p13 }
  0x48   : > { %622 = shalt.err (!%p619_p11)
}
  0x49   : > { %514 = dma.hbm_to_vmem [thread:$0]  (!%p830_p10), %s828_s14, 128, %s834_s7, %s200_s15  }
  0x4a   : > { %p946_p5 = scmp.ne.s32.totalorder %s941_s27, 0 }
  0x4b   : > { %s864_s29 = sand.u32 (!%p946_p5), 1, %s685_s21   ;;  %p947_p0 = scmp.ne.s32.totalorder (!%p946_p5), %s939_s25, 0 }
  0x4c   : > { %219 = sbr.rel (%p946_p5) target bundleno = 504 (0x1f8), region = 40  ;;  %s469_s16 = sshll.u32 (!%p946_p5), %s864_s29, 3 }
  0x4d   : > { %s222_s17 = scalar_lea.sflag (!%p946_p5), [#allocation4], %s864_s29  ;;  %s225_s18 = scalar_lea.vmem (!%p946_p5), [#allocation3], %s469_s16 }
  0x53   : > { %668 = dma.done.wait (%p947_p0), %s222_s17, 128  }
  0x54   : > { %670 = vsyncadd (%p947_p0), %s222_s17, 4294967168  ;;  %p948_p2 = scmp.eq.s32.totalorder %s757_s4, 0 }
  0x56   : > { %672 = dma.done.wait (%p948_p2), [#allocation7], 512   ;;  %p949_p10 = pmov %p948_p2 }
  0x57   : > { %v699_v0 = vmov 0.0|0.0   ;;  %vm700_vm0 = vmmov 0   ;;  %v701_v1 = vmov 0.0   ;;  %v256_v2 = vld [vmem:[#allocation6] sm:$0xff]  ;;  %v257_v3 = vld [vmem:[#allocation6 + $0x8] sm:$0xff]  ;;  %v258_v4 = vld [vmem:[#allocation6 + $0x10] sm:$0xff]  ;;  %v364_v24 = vlaneseq }
  0x58   : > { %674 = vsyncadd (%p949_p10), [#allocation7], 4294966784  ;;  %493 = vmatprep.subr.bf16.mxu0 %v699_v0  ;;  %490 = vmatprep.mubr.msk.f32.mxu0 %vm700_vm0, %v701_v1  ;;  %v494_v5 = vpack.c.bf16 %v257_v3, %v256_v2  ;;  %v259_v6 = vld [vmem:[#allocation6 + $0x18] sm:$0xff]  ;;  %vm267_vm1 = vcmask 261120   ;;  %v471_v9 = vld [vmem:[%s932_s2] ss:$0 sm:$0xff] }
  0x59   : > { %v497_v7 = vpack.c.bf16 %v259_v6, %v258_v4  ;;  %v255_v8 = vld [vmem:[%s225_s18] sm:$0xff]  ;;  %vm350_vm2 = vcmask 523264   ;;  %s354_s8 = sld [smem:[#allocation2]]  ;;  %v365_v25 = vand.u32 127, %v364_v24  ;;  %v367_v26 = vshrl.u32 %v364_v24, 7  ;;  %s474_s15 = sshll.u32 %s757_s4, 4 }
  0x5a   : > { %495 = vmatpush3.bf16.msra.mxu0 %v494_v5  ;;  %v473_v13 = vld [vmem:[%s933_s3] ss:$0 sm:$0xff]  ;;  %s254_s19 = scalar_lea.vmem [#allocation8], %s864_s29  ;;  %vm371_vm3 = vcmask 57344   ;;  %s887_s12 = scalar_lea.hbm %s935_s5, %s474_s15 }
  0x5b   : > { %496 = vmatprep.subr.bf16.mxu0 %v699_v0  ;;  %v368_v27 = vsub.s32 %v365_v25, %v367_v26  ;;  %s386_s24 = sshll.u32 %s254_s19, 4  ;;  %s374_s30 = scalar_lea.sflag [#allocation5], %s864_s29  ;;  %s889_s24 = int_to_ptr.vmem [resolvable:$true] %s386_s24 }
  0x5c   : > { %s623_s13 = scalar_lea.vmem %s889_s24, 16  ;;  %s702_s4 = smov [#allocation8]  }
  0x5d   : > { %p624_p1 = scmp.ne.s32.totalorder %s889_s24, %s623_s13  ;;  %s627_s16 = sshll.u32 %s702_s4, 4  ;;  %s628_s16 = int_to_ptr.vmem [resolvable:$false] %s627_s16 }
  0x5e   : > { %498 = vmatpush3.bf16.msra.mxu0 %v497_v7  ;;  %s629_s17 = scalar_lea.vmem %s628_s16, 32  ;;  %p630_p8 = scmp.lt.s32.totalorder %s889_s24, %s628_s16 }
  0x5f   : > { %v355_v17 = vstv %s354_s8  ;;  %p625_p4 = pnand %p624_p1, %p819_p12  ;;  %p631_p13 = scmp.lt.s32.totalorder %s629_s17, %s623_s13 }
  0x61   : > { %491 = vmatmul.mubr.msk.f32.vlgmr.msra.gmra.mrb[0].mxu0 %vm267_vm1, %v255_v8  ;;  %p626_p6 = pneg %p625_p4  ;;  %p632_p3 = por %p631_p13, %p630_p8 }
  0x63   : > { %p633_p7 = pnand %p632_p3, %p626_p6 }
 0x134   : > { %v337_v10 = vpop.f32.mrb[0].mxu0 }
 0x135   : > { %v338_v11 = vadd.f32 %v471_v9, %v337_v10  ;;  %v492_v12 = vpop.f32.mrb[1].mxu0 }
 0x137   : > { %v341_v14 = vmax.f32 %v338_v11, 0.0 }
 0x139   : > { %v349_v15 = vmul.f32 %v473_v13, %v341_v14 }
 0x13b   : > { %v351_v16 = vsel %vm350_vm2, %v349_v15, 0.0 }
 0x13c   : > { %352 = vadd.xlane.f32.xlu0 %v351_v16 }
 0x1c9   : > { %v353_v18 = vpop.xlane.xlu0 %352 }
 0x1ca   : > { %v356_v19 = vadd.f32 %v355_v17, %v353_v18 }
 0x1cc   : > { %v357_v20 = vsub.f32 0.0, %v356_v19 }
 0x1ce   : > { %v358_v21 = vmul.f32 1.442695, %v357_v20 }
 0x1d0   : > { %561 = vpow2.f32 %v358_v21 }
 0x1da   : > { %v562_v22 = vpop.eup %561 }
 0x1db   : > { %v360_v23 = vadd.f32 1.0, %v562_v22 }
 0x1dd   : > { %563 = vrcp.f32 %v360_v23 }
 0x1e7   : > { %v564_v28 = vpop.eup %563 }
 0x1e8   : > { %v369_v29 = vrot.slane %v564_v28, %v368_v27 }
 0x1ea   : > { %372 = vst.msk [vmem:[%s254_s19] sm:$0x1] %vm371_vm3, %v369_v29 }
 0x1eb   : > { %636 = shalt.err (!%p633_p7)
}
 0x1ec   : > { %s637_s29 = scalar_lea.hbm %s887_s12, 16  ;;  %s641_s27 = scalar_lea.hbm %s935_s5, 48 }
 0x1ed   : > { %p638_p9 = scmp.ne.s32.totalorder %s887_s12, %s637_s29  ;;  %p642_p0 = scmp.lt.u32.totalorder %s887_s12, %s935_s5 }
 0x1ee   : > { %p643_p2 = scmp.lt.u32.totalorder %s641_s27, %s637_s29  ;;  %p645_p1 = scmp.lt.u32.totalorder %s637_s29, %s887_s12 }
 0x1ef   : > { %p639_p11 = pnand %p638_p9, %p819_p12 }
 0x1f0   : > { %p644_p10 = por %p643_p2, %p642_p0 }
 0x1f1   : > { %p640_p5 = pneg %p639_p11 }
 0x1f2   : > { %p646_p4 = por %p645_p1, %p644_p10 }
 0x1f4   : > { %p647_p6 = pnand %p646_p4, %p640_p5 }
 0x1f6   : > { %650 = shalt.err (!%p647_p6)
}
 0x1f7   : > { %505 = dma.vmem_to_hbm [thread:$0]  (%p819_p12), %s889_s24, 16, %s887_s12, %s374_s30  }
 0x1f8 PF: > { %p522_p8 = scmp.ge.s32.totalorder %s693_s23, 2  ;;  %s398_s8 = sand.u32 1, %s681_s20  }
 0x1f9   : > { %p950_p13 = scmp.ne.s32.totalorder %s940_s26, 0  ;;  %s399_s15 = scalar_lea.sflag [#allocation5], %s398_s8 }
 0x1fb   : > { %p516_p3 = pnand %p522_p8, %p950_p13 }
 0x1fd   : > { %676 = dma.done.wait (!%p516_p3), %s399_s15, 16  }
 0x1fe   : > { %678 = vsyncadd (!%p516_p3), %s399_s15, 4294967280  ;;  %p20_p7 = scmp.ge.s32.totalorder %s789_s6, 5   ;;  %s951_s20 = smov %s685_s21 }
 0x1ff   : > { %s952_s21 = smov %s689_s22  ;;  %s953_s22 = smov %s815_s28 }
 0x200   : > { %s954_s23 = smov %s789_s6  ;;  %22 = sbr.rel (!%p20_p7) target bundleno = 8 (0x8), region = 89 }
 0x207   :  { %403 = vsyncpa [#allocation4], 1 }
 0x208   :  { %405 = vsyncpa [#allocation4 + $0x1], 1 }
 0x209   :  { %406 = vsyncpa [#allocation7], 1 }
 0x20a   :  { %407 = vsyncpa [#allocation5], 1 }
 0x20b   :  { %409 = vsyncpa [#allocation5 + $0x1], 1 }

</bundles_post_ra>
